<compile_context>
chip_gen: v7x
topology: tpu7x:2x2x1
jax: 0.10.0
libtpu: 0.0.40
codegen_flags: <defaults>
</compile_context>

<pallas_src>
import jax
import jax.numpy as jnp
from jax.experimental import pallas as pl
from jax.experimental.pallas import tpu as pltpu


def _simple_score_kernel(a_ref, b_ref, c_ref, o_ref):
    # a_ref/b_ref/c_ref: (TB, 2D) tiles, batch on sublanes, features on lanes.
    #   a = [he | hi]   (head_embed[h] ; tail_embed[h])
    #   b = [re | ri]   (rela_embed[r] ; rela_inv_embed[r])
    #   c = [te | ti]   (tail_embed[t] ; head_embed[t])
    # score = sum_D(he*re*te) + sum_D(hi*ri*ti)  ==  sum over the 2D lane axis.
    a = a_ref[...].astype(jnp.float32)
    b = b_ref[...].astype(jnp.float32)
    c = c_ref[...].astype(jnp.float32)
    o_ref[...] = jnp.sum(a * b * c, axis=-1, keepdims=True)  # (TB, 1)


def prepare_tables(params):
    """Precompute call-invariant lane-concatenated lookup tables (do this ONCE)."""
    head_tbl = params["head_embed"]          # [n_ent, D]
    tail_tbl = params["tail_embed"]          # [n_ent, D]
    rela_tbl = params["rela_embed"]          # [n_rel, D]
    rinv_tbl = params["rela_inv_embed"]      # [n_rel, D]
    return {
        "ent":     jnp.concatenate([head_tbl, tail_tbl], axis=-1),  # row i = [head_i | tail_i]
        "ent_swp": jnp.concatenate([tail_tbl, head_tbl], axis=-1),  # row i = [tail_i | head_i]
        "rel":     jnp.concatenate([rela_tbl, rinv_tbl], axis=-1),  # row i = [rela_i | rinv_i]
    }


def simple_forward(tables, head, tail, rela, *, block_n=512):
    """Equivalent of SimplEModule.forward(head, tail, rela).

    `tables` comes from prepare_tables(params) (precomputed once)."""
    assert block_n % 128 == 0, "block_n must be a multiple of 128 (lane width)"

    ent_tbl = tables["ent"]       # [n_ent, 2D]
    ent_swp = tables["ent_swp"]   # [n_ent, 2D]
    rel_tbl = tables["rel"]       # [n_rel, 2D]
    twod = ent_tbl.shape[1]

    shapes = head.shape
    h = head.reshape(-1).astype(jnp.int32)
    t = tail.reshape(-1).astype(jnp.int32)
    r = rela.reshape(-1).astype(jnp.int32)
    n = h.shape[0]

    # Lane-dense batch tile (multiple of 128 sublanes/rows); pad n up to a multiple.
    tb = min(block_n, 128 * pl.cdiv(n, 128))
    n_pad = pl.cdiv(n, tb) * tb
    pad = n_pad - n
    if pad:
        h = jnp.pad(h, (0, pad))   # pads with index 0 -> valid rows, scores dropped
        t = jnp.pad(t, (0, pad))
        r = jnp.pad(r, (0, pad))

    # Row gathers (XLA), natural [n_pad, 2D] layout -- no transpose / relayout.
    a = jnp.take(ent_tbl, h, axis=0)      # [n_pad, 2D] = [he | hi]
    b = jnp.take(rel_tbl, r, axis=0)      # [n_pad, 2D] = [re | ri]
    c = jnp.take(ent_swp, t, axis=0)      # [n_pad, 2D] = [te | ti]

    # Explicit VMEM budget: 3 inputs x 2 pipeline buffers x (TB x 2D) tiles + output,
    # with headroom; keep well under v7x's 64 MiB physical VMEM.
    itemsize = jnp.dtype(ent_tbl.dtype).itemsize
    working = 3 * 2 * tb * twod * itemsize + 2 * tb * 4
    vmem_limit = int(min(2 * working + (4 << 20), 48 << 20))

    n_blk = n_pad // tb
    out = pl.pallas_call(
        _simple_score_kernel,
        grid=(n_blk,),
        in_specs=[pl.BlockSpec((tb, twod), lambda i: (i, 0)) for _ in range(3)],
        out_specs=pl.BlockSpec((tb, 1), lambda i: (i, 0)),
        out_shape=jax.ShapeDtypeStruct((n_pad, 1), jnp.float32),
        compiler_params=pltpu.CompilerParams(
            dimension_semantics=("parallel",),
            vmem_limit_bytes=vmem_limit),
    )(a, b, c)

    return out.reshape(-1)[:n].reshape(shapes)


def _xavier_uniform(key, shape, dtype=jnp.float32):
    # PyTorch xavier_uniform_ for a 2-D weight: fan_out = shape[0], fan_in = shape[1]
    fan_out, fan_in = shape
    bound = (6.0 / (fan_in + fan_out)) ** 0.5
    return jax.random.uniform(key, shape, dtype=dtype, minval=-bound, maxval=bound)


def init_params(key, n_ent, n_rel, hidden_dim):
    k1, k2, k3, k4 = jax.random.split(key, 4)
    return {
        "head_embed": _xavier_uniform(k1, (n_ent, hidden_dim)),
        "tail_embed": _xavier_uniform(k2, (n_ent, hidden_dim)),
        "rela_embed": _xavier_uniform(k3, (n_rel, hidden_dim)),
        "rela_inv_embed": _xavier_uniform(k4, (n_rel, hidden_dim)),
    }


def simple_forward_ref(params, head, tail, rela):
    """Pure-JAX reference for correctness checking."""
    shapes = head.shape
    h = head.reshape(-1)
    t = tail.reshape(-1)
    r = rela.reshape(-1)
    he = jnp.take(params["head_embed"], h, axis=0)
    te = jnp.take(params["tail_embed"], t, axis=0)
    re = jnp.take(params["rela_embed"], r, axis=0)
    hi = jnp.take(params["tail_embed"], h, axis=0)
    ti = jnp.take(params["head_embed"], t, axis=0)
    ri = jnp.take(params["rela_inv_embed"], r, axis=0)
    score = jnp.sum(he * re * te, axis=-1) + jnp.sum(hi * ri * ti, axis=-1)
    return score.reshape(shapes)


if __name__ == "__main__":
    n_ent, n_rel, hidden_dim = 10, 5, 32
    batch, neg = 2, 8   # index tensors of shape (2, 8), like (batch, num_samples)

    key = jax.random.PRNGKey(0)
    kp, kh, kt, kr = jax.random.split(key, 4)
    params = init_params(kp, n_ent, n_rel, hidden_dim)
    tables = jax.tree_util.tree_map(jax.block_until_ready, prepare_tables(params))

    head = jax.random.randint(kh, (batch, neg), 0, n_ent, dtype=jnp.int32)
    tail = jax.random.randint(kt, (batch, neg), 0, n_ent, dtype=jnp.int32)
    rela = jax.random.randint(kr, (batch, neg), 0, n_rel, dtype=jnp.int32)

    fwd = jax.jit(lambda tbls, h, t, r: simple_forward(tbls, h, t, r))
    score = jax.block_until_ready(fwd(tables, head, tail, rela))

    ref = simple_forward_ref(params, head, tail, rela)
    assert score.shape == head.shape
    assert jnp.allclose(score, ref, atol=1e-5, rtol=1e-5), (score, ref)

    print("KERNEL_OK")
</pallas_src>

<mosaic_0001>
module attributes {stable_mosaic.version = 11 : i64} {
  func.func @_simple_score_kernel(%arg0: i32, %arg1: memref<128x64xf32, #tpu.memory_space<vmem>>, %arg2: memref<128x64xf32, #tpu.memory_space<vmem>>, %arg3: memref<128x64xf32, #tpu.memory_space<vmem>>, %arg4: memref<128x1xf32, #tpu.memory_space<vmem>>) attributes {dimension_semantics = [#tpu.dimension_semantics<parallel>], iteration_bounds = array<i64: 1>, scalar_prefetch = 0 : i64, scratch_operands = 0 : i64, tpu.core_type = #tpu.core_type<tc>, window_params = [{transform_indices = @transform_0, window_bounds = array<i64: 128, 64>}, {transform_indices = @transform_1, window_bounds = array<i64: 128, 64>}, {transform_indices = @transform_2, window_bounds = array<i64: 128, 64>}, {transform_indices = @transform_3, window_bounds = array<i64: 128, 1>}]} {
    %c0 = arith.constant 0 : index
    %c0_0 = arith.constant 0 : index
    %0 = vector.load %arg1[%c0, %c0_0] : memref<128x64xf32, #tpu.memory_space<vmem>>, vector<128x64xf32>
    %c0_1 = arith.constant 0 : index
    %c0_2 = arith.constant 0 : index
    %1 = vector.load %arg2[%c0_1, %c0_2] : memref<128x64xf32, #tpu.memory_space<vmem>>, vector<128x64xf32>
    %c0_3 = arith.constant 0 : index
    %c0_4 = arith.constant 0 : index
    %2 = vector.load %arg3[%c0_3, %c0_4] : memref<128x64xf32, #tpu.memory_space<vmem>>, vector<128x64xf32>
    %3 = arith.mulf %0, %1 : vector<128x64xf32>
    %4 = arith.mulf %3, %2 : vector<128x64xf32>
    %cst = arith.constant dense<0.000000e+00> : vector<128xf32>
    %5 = vector.multi_reduction <add>, %4, %cst [1] : vector<128x64xf32> to vector<128xf32>
    %6 = vector.shape_cast %5 : vector<128xf32> to vector<128x1xf32>
    %c0_5 = arith.constant 0 : index
    %c0_6 = arith.constant 0 : index
    %7 = vector.load %arg4[%c0_5, %c0_6] : memref<128x1xf32, #tpu.memory_space<vmem>>, vector<128x1xf32>
    tpu.vector_store %arg4[%c0_5, %c0_6], %6 {strides = array<i32>} : memref<128x1xf32, #tpu.memory_space<vmem>>, vector<128x1xf32>,
    return
  }
  func.func @transform_0(%arg0: i32) -> (i32, i32) {
    %c0_i32 = arith.constant 0 : i32
    %c0_i32_0 = arith.constant 0 : i32
    return %arg0, %c0_i32 : i32, i32
  }
  func.func @transform_1(%arg0: i32) -> (i32, i32) {
    %c0_i32 = arith.constant 0 : i32
    %c0_i32_0 = arith.constant 0 : i32
    return %arg0, %c0_i32 : i32, i32
  }
  func.func @transform_2(%arg0: i32) -> (i32, i32) {
    %c0_i32 = arith.constant 0 : i32
    %c0_i32_0 = arith.constant 0 : i32
    return %arg0, %c0_i32 : i32, i32
  }
  func.func @transform_3(%arg0: i32) -> (i32, i32) {
    %c0_i32 = arith.constant 0 : i32
    %c0_i32_0 = arith.constant 0 : i32
    return %arg0, %c0_i32 : i32, i32
  }
}

</mosaic_0001>

<bundles_post_ra>
// kernel: _lambda_.1
= control target key start
LH: loop header
LB: loop body
LE: loop exit
PB: predicated region body
PF: predicated region fallthrough
CT: control target
= control target key end

     0   :  { %vm94_vm0 = vcmask 523264   ;;  %vm143_vm1 = vcmask 7168   ;;  %s408_s0 = inlined_call_operand.vmem [shape: f32[128,64], index: 0, kind: input, shape index: {}]   ;;  %s409_s1 = inlined_call_operand.vmem [shape: f32[128,64], index: 1, kind: input, shape index: {}]   ;;  %s410_s2 = inlined_call_operand.vmem [shape: f32[128,64], index: 2, kind: input, shape index: {}]   ;;  %s411_s3 = inlined_call_operand.vmem [shape: f32[128,1], index: 3, kind: output, shape index: {}]  }
   0x1   :  { %v16_v0 = vld [vmem:[%s408_s0 + $0x10] sm:$0xff]  ;;  %v14_v4 = vld [vmem:[%s408_s0] sm:$0xff]  ;;  %v17_v8 = vld [vmem:[%s408_s0 + $0x18] sm:$0xff] }
   0x2   :  { %v32_v1 = vld [vmem:[%s409_s1 + $0x10] sm:$0xff]  ;;  %v30_v5 = vld [vmem:[%s409_s1] sm:$0xff]  ;;  %v33_v9 = vld [vmem:[%s409_s1 + $0x18] sm:$0xff] }
   0x3   :  { %v48_v2 = vld [vmem:[%s410_s2 + $0x10] sm:$0xff]  ;;  %v64_v3 = vmul.f32 %v32_v1, %v16_v0  ;;  %v46_v6 = vld [vmem:[%s410_s2] sm:$0xff]  ;;  %v62_v7 = vmul.f32 %v30_v5, %v14_v4  ;;  %v49_v10 = vld [vmem:[%s410_s2 + $0x18] sm:$0xff]  ;;  %v65_v12 = vmul.f32 %v33_v9, %v17_v8 }
   0x4   :  { %v15_v13 = vld [vmem:[%s408_s0 + $0x8] sm:$0xff]  ;;  %v18_v24 = vld [vmem:[%s408_s0 + $0x20] sm:$0xff]  ;;  %v21_v30 = vld [vmem:[%s408_s0 + $0x38] sm:$0xff] }
   0x5   :  { %v80_v11 = vmul.f32 %v64_v3, %v48_v2  ;;  %v31_v14 = vld [vmem:[%s409_s1 + $0x8] sm:$0xff]  ;;  %v78_v16 = vmul.f32 %v62_v7, %v46_v6  ;;  %v81_v22 = vmul.f32 %v65_v12, %v49_v10  ;;  %v34_v25 = vld [vmem:[%s409_s1 + $0x20] sm:$0xff]  ;;  %v37_v31 = vld [vmem:[%s409_s1 + $0x38] sm:$0xff] }
   0x6   :  { %v47_v15 = vld [vmem:[%s410_s2 + $0x8] sm:$0xff]  ;;  %v63_v17 = vmul.f32 %v31_v14, %v15_v13  ;;  %v50_v26 = vld [vmem:[%s410_s2 + $0x20] sm:$0xff]  ;;  %v66_v29 = vmul.f32 %v34_v25, %v18_v24  ;;  %v69_v34 = vmul.f32 %v37_v31, %v21_v30  ;;  %v20_v35 = vld [vmem:[%s408_s0 + $0x30] sm:$0xff] }
   0x7   :  { %v19_v18 = vld [vmem:[%s408_s0 + $0x28] sm:$0xff]  ;;  %v101_v21 = vsel %vm94_vm0, %v80_v11, 0.0  ;;  %v95_v27 = vsel %vm94_vm0, %v78_v16, 0.0  ;;  %v104_v32 = vsel %vm94_vm0, %v81_v22, 0.0  ;;  %v36_v36 = vld [vmem:[%s409_s1 + $0x30] sm:$0xff]  ;;  %v53_v39 = vld [vmem:[%s410_s2 + $0x38] sm:$0xff] }
   0x8   :  { %v35_v19 = vld [vmem:[%s409_s1 + $0x28] sm:$0xff]  ;;  %102 = vadd.xlane.f32.xlu1 %v101_v21  ;;  %v79_v28 = vmul.f32 %v63_v17, %v47_v15  ;;  %96 = vadd.xlane.f32.xlu0 %v95_v27  ;;  %v82_v38 = vmul.f32 %v66_v29, %v50_v26  ;;  %v68_v40 = vmul.f32 %v36_v36, %v20_v35  ;;  %v52_v43 = vld [vmem:[%s410_s2 + $0x30] sm:$0xff]  ;;  %v22_v44 = vld [vmem:[%s408_s0 + $0x40] sm:$0xff] }
   0x9   :  { %v51_v20 = vld [vmem:[%s410_s2 + $0x28] sm:$0xff]  ;;  %v67_v23 = vmul.f32 %v35_v19, %v19_v18  ;;  %v38_v45 = vld [vmem:[%s409_s1 + $0x40] sm:$0xff]  ;;  %v85_v47 = vmul.f32 %v69_v34, %v53_v39  ;;  %v25_v53 = vld [vmem:[%s408_s0 + $0x58] sm:$0xff] }
   0xa   :  { %v98_v37 = vsel %vm94_vm0, %v79_v28, 0.0  ;;  %v23_v41 = vld [vmem:[%s408_s0 + $0x48] sm:$0xff]  ;;  %v107_v49 = vsel %vm94_vm0, %v82_v38, 0.0  ;;  %v84_v50 = vmul.f32 %v68_v40, %v52_v43  ;;  %v70_v52 = vmul.f32 %v38_v45, %v22_v44  ;;  %v41_v54 = vld [vmem:[%s409_s1 + $0x58] sm:$0xff]  ;;  %v54_v55 = vld [vmem:[%s410_s2 + $0x40] sm:$0xff] }
   0xb   :  { %v83_v33 = vmul.f32 %v67_v23, %v51_v20  ;;  %v39_v42 = vld [vmem:[%s409_s1 + $0x48] sm:$0xff]  ;;  %v24_v56 = vld [vmem:[%s408_s0 + $0x50] sm:$0xff]  ;;  %v116_v58 = vsel %vm94_vm0, %v85_v47, 0.0  ;;  %v73_v60 = vmul.f32 %v41_v54, %v25_v53  ;;  %v57_v63 = vld [vmem:[%s410_s2 + $0x58] sm:$0xff] }
   0xc   :  { %105 = vadd.xlane.f32.xlu1 %v104_v32  ;;  %99 = vadd.xlane.f32.xlu0 %v98_v37  ;;  %v71_v48 = vmul.f32 %v39_v42, %v23_v41  ;;  %v55_v51 = vld [vmem:[%s410_s2 + $0x48] sm:$0xff]  ;;  %v40_v57 = vld [vmem:[%s409_s1 + $0x50] sm:$0xff]  ;;  %v113_v61 = vsel %vm94_vm0, %v84_v50, 0.0  ;;  %v86_v62 = vmul.f32 %v70_v52, %v54_v55  ;;  %v26_v4 = vld [vmem:[%s408_s0 + $0x60] sm:$0xff] }
   0xd   :  { %v110_v46 = vsel %vm94_vm0, %v83_v33, 0.0  ;;  %v72_v0 = vmul.f32 %v40_v57, %v24_v56  ;;  %v27_v1 = vld [vmem:[%s408_s0 + $0x68] sm:$0xff]  ;;  %v56_v3 = vld [vmem:[%s410_s2 + $0x50] sm:$0xff]  ;;  %v42_v5 = vld [vmem:[%s409_s1 + $0x60] sm:$0xff]  ;;  %v89_v7 = vmul.f32 %v73_v60, %v57_v63 }
   0xe   :  { %v87_v59 = vmul.f32 %v71_v48, %v55_v51  ;;  %v43_v2 = vld [vmem:[%s409_s1 + $0x68] sm:$0xff]  ;;  %v119_v9 = vsel %vm94_vm0, %v86_v62, 0.0  ;;  %v74_v12 = vmul.f32 %v42_v5, %v26_v4  ;;  %v29_v13 = vld [vmem:[%s408_s0 + $0x78] sm:$0xff]  ;;  %v58_v15 = vld [vmem:[%s410_s2 + $0x60] sm:$0xff] }
   0xf   :  { %v75_v8 = vmul.f32 %v43_v2, %v27_v1  ;;  %v88_v10 = vmul.f32 %v72_v0, %v56_v3  ;;  %v59_v11 = vld [vmem:[%s410_s2 + $0x68] sm:$0xff]  ;;  %v45_v14 = vld [vmem:[%s409_s1 + $0x78] sm:$0xff]  ;;  %v28_v16 = vld [vmem:[%s408_s0 + $0x70] sm:$0xff]  ;;  %v128_v18 = vsel %vm94_vm0, %v89_v7, 0.0 }
  0x10   :  { %111 = vadd.xlane.f32.xlu1 %v110_v46  ;;  %108 = vadd.xlane.f32.xlu0 %v107_v49  ;;  %v122_v6 = vsel %vm94_vm0, %v87_v59, 0.0  ;;  %v44_v17 = vld [vmem:[%s409_s1 + $0x70] sm:$0xff]  ;;  %v77_v20 = vmul.f32 %v45_v14, %v29_v13  ;;  %v90_v22 = vmul.f32 %v74_v12, %v58_v15  ;;  %v61_v23 = vld [vmem:[%s410_s2 + $0x78] sm:$0xff] }
  0x11   :  { %v91_v19 = vmul.f32 %v75_v8, %v59_v11  ;;  %v125_v21 = vsel %vm94_vm0, %v88_v10, 0.0  ;;  %v76_v24 = vmul.f32 %v44_v17, %v28_v16  ;;  %v60_v25 = vld [vmem:[%s410_s2 + $0x70] sm:$0xff] }
  0x12   :  { %v93_v27 = vmul.f32 %v77_v20, %v61_v23  ;;  %v131_v28 = vsel %vm94_vm0, %v90_v22, 0.0 }
  0x13   :  { %v134_v26 = vsel %vm94_vm0, %v91_v19, 0.0  ;;  %v92_v29 = vmul.f32 %v76_v24, %v60_v25 }
  0x14   :  { %117 = vadd.xlane.f32.xlu1 %v116_v58  ;;  %114 = vadd.xlane.f32.xlu0 %v113_v61  ;;  %v140_v30 = vsel %vm94_vm0, %v93_v27, 0.0 }
  0x15   :  { %v137_v31 = vsel %vm94_vm0, %v92_v29, 0.0 }
  0x18   :  { %123 = vadd.xlane.f32.xlu1 %v122_v6  ;;  %120 = vadd.xlane.f32.xlu0 %v119_v9 }
  0x1c   :  { %129 = vadd.xlane.f32.xlu1 %v128_v18  ;;  %126 = vadd.xlane.f32.xlu0 %v125_v21 }
  0x20   :  { %135 = vadd.xlane.f32.xlu1 %v134_v26  ;;  %132 = vadd.xlane.f32.xlu0 %v131_v28 }
  0x24   :  { %141 = vadd.xlane.f32.xlu1 %v140_v30  ;;  %138 = vadd.xlane.f32.xlu0 %v137_v31 }
  0x95   :  { %v103_v32 = vpop.xlane.xlu1 %102  ;;  %v97_v33 = vpop.xlane.xlu0 %96 }
  0x96   :  { %146 = vst.msk [vmem:[%s411_s3 + $0x10] sm:$0xff] %vm143_vm1, %v103_v32  ;;  %144 = vst.msk [vmem:[%s411_s3] sm:$0xff] %vm143_vm1, %v97_v33 }
  0x99   :  { %v106_v34 = vpop.xlane.xlu1 %105  ;;  %v100_v35 = vpop.xlane.xlu0 %99 }
  0x9a   :  { %147 = vst.msk [vmem:[%s411_s3 + $0x18] sm:$0xff] %vm143_vm1, %v106_v34  ;;  %145 = vst.msk [vmem:[%s411_s3 + $0x8] sm:$0xff] %vm143_vm1, %v100_v35 }
  0x9d   :  { %v112_v36 = vpop.xlane.xlu1 %111  ;;  %v109_v37 = vpop.xlane.xlu0 %108 }
  0x9e   :  { %149 = vst.msk [vmem:[%s411_s3 + $0x28] sm:$0xff] %vm143_vm1, %v112_v36  ;;  %148 = vst.msk [vmem:[%s411_s3 + $0x20] sm:$0xff] %vm143_vm1, %v109_v37 }
  0xa1   :  { %v118_v38 = vpop.xlane.xlu1 %117  ;;  %v115_v39 = vpop.xlane.xlu0 %114 }
  0xa2   :  { %151 = vst.msk [vmem:[%s411_s3 + $0x38] sm:$0xff] %vm143_vm1, %v118_v38  ;;  %150 = vst.msk [vmem:[%s411_s3 + $0x30] sm:$0xff] %vm143_vm1, %v115_v39 }
  0xa5   :  { %v124_v40 = vpop.xlane.xlu1 %123  ;;  %v121_v41 = vpop.xlane.xlu0 %120 }
  0xa6   :  { %153 = vst.msk [vmem:[%s411_s3 + $0x48] sm:$0xff] %vm143_vm1, %v124_v40  ;;  %152 = vst.msk [vmem:[%s411_s3 + $0x40] sm:$0xff] %vm143_vm1, %v121_v41 }
  0xa9   :  { %v130_v42 = vpop.xlane.xlu1 %129  ;;  %v127_v43 = vpop.xlane.xlu0 %126 }
  0xaa   :  { %155 = vst.msk [vmem:[%s411_s3 + $0x58] sm:$0xff] %vm143_vm1, %v130_v42  ;;  %154 = vst.msk [vmem:[%s411_s3 + $0x50] sm:$0xff] %vm143_vm1, %v127_v43 }
  0xad   :  { %v136_v44 = vpop.xlane.xlu1 %135  ;;  %v133_v45 = vpop.xlane.xlu0 %132 }
  0xae   :  { %157 = vst.msk [vmem:[%s411_s3 + $0x68] sm:$0xff] %vm143_vm1, %v136_v44  ;;  %156 = vst.msk [vmem:[%s411_s3 + $0x60] sm:$0xff] %vm143_vm1, %v133_v45 }
  0xb1   :  { %v142_v46 = vpop.xlane.xlu1 %141  ;;  %v139_v47 = vpop.xlane.xlu0 %138 }
  0xb2   :  { %159 = vst.msk [vmem:[%s411_s3 + $0x78] sm:$0xff] %vm143_vm1, %v142_v46  ;;  %158 = vst.msk [vmem:[%s411_s3 + $0x70] sm:$0xff] %vm143_vm1, %v139_v47 }

</bundles_post_ra>
